<compile_context>
chip_gen: v7x
topology: tpu7x:2x2x1
jax: 0.10.0
libtpu: 0.0.40
codegen_flags: <defaults>
</compile_context>

<pallas_src>
import functools

import jax
import jax.numpy as jnp
from jax.experimental import pallas as pl
from jax.experimental.pallas import tpu as pltpu


def _kwta_invabs_kernel(x_ref, o_ref, bits_ref, *, k, num_passes):
    """Keep x where |x| >= (k-th smallest |x| in the row); zero elsewhere.

    x_ref / o_ref : (R, N) tiles in VMEM (N = H*W on the lane axis).
    bits_ref      : (R, N) int32 VMEM scratch, monotone integer remap of |x|.
    """
    R, N = x_ref.shape

    # Monotone int32 remap of |x| built purely in integer space: for finite
    # IEEE-754 floats, clearing the sign bit of the f32 pattern orders
    # identically to |x|.  (bf16/f16 inputs are upcast exactly.)
    x_f32 = x_ref[...].astype(jnp.float32)
    bits_ref[...] = pltpu.bitcast(x_f32, jnp.int32) & jnp.int32(0x7FFFFFFF)

    use_mxu = (N % 128 == 0)
    if use_mxu:
        # Ones-matmul count: (R,N) 0/1 bf16 x (N,128) bf16 ones -> exact f32
        # counts, lane-replicated across the 128 output lanes.  MXU does the
        # cross-lane reduction, leaving only VALU compares/selects in the loop.
        ones_rhs = jnp.ones((N, 128), jnp.bfloat16)
        prefix0 = jnp.zeros((R, 128), jnp.int32)
        k_f = jnp.float32(k)
    else:
        prefix0 = jnp.zeros((R, 1), jnp.int32)

    def body(i, prefix):
        bitpos = jnp.int32(30) - i                       # sign bit of |x| is 0
        cand = prefix | jnp.left_shift(jnp.int32(1), bitpos)
        below = bits_ref[...] < cand[:, :1]              # (R, N) bool
        if use_mxu:
            cnt = jnp.dot(below.astype(jnp.bfloat16), ones_rhs,
                          preferred_element_type=jnp.float32)      # (R, 128)
            take = cnt < k_f
        else:
            cnt = jnp.sum(below.astype(jnp.int32), axis=-1, keepdims=True)
            take = cnt < k
        # cand <= k-th smallest  <=>  #(bits < cand) < k  =>  accept the bit.
        return jnp.where(take, cand, prefix)

    prefix = jax.lax.fori_loop(0, num_passes, body, prefix0)

    # keep  <=>  |x| >= k-th smallest |x|   (ties kept, matching torch `>=`)
    keep = bits_ref[...] >= prefix[:, :1]
    xv = x_ref[...]
    o_ref[...] = jnp.where(keep, xv, jnp.zeros_like(xv))


def _round_up(v, m):
    return -(-v // m) * m


def sparsify2d_invabs(x, sparse_ratio=0.5):
    """JAX/Pallas equivalent of Sparsify2D_invabs.forward. x: (B, C, H, W)."""
    B, C, H, W = x.shape
    N = H * W
    k = int(sparse_ratio * N)
    if not (1 <= k <= N):
        raise ValueError("int(sparse_ratio * H * W) must be in [1, H*W]")

    rows = B * C
    xf = x.reshape(rows, N)  # free reshape: channel rows x spatial lanes

    # ---- tile sizing -------------------------------------------------------
    itemsize = jnp.dtype(x.dtype).itemsize
    n_phys = _round_up(N, 128)                       # physical lanes per row
    # 2x in + 2x out (pipeline double buffers) + int32 bits scratch + bf16
    # `below` intermediate, plus ~2 KiB/row of (R,128) loop temporaries.
    bytes_per_row = n_phys * (4 * itemsize + 4 + 2) + 2048
    vmem_budget = 20 << 20                           # headroom under 32 MiB limit
    max_rows_by_vmem = max(8, (vmem_budget // bytes_per_row) // 8 * 8)
    block_rows = int(min(1024, max_rows_by_vmem))
    if block_rows >= rows:
        if rows >= 16:
            # >=2 grid steps so the ("parallel",) axis can feed both v7x cores.
            block_rows = _round_up(-(-rows // 2), 8)
        else:
            block_rows = rows                        # single full-extent block
    grid = (pl.cdiv(rows, block_rows),)

    # bf16 inputs: f32 pattern of |x| has zero low 16 bits -> 15 passes suffice.
    num_passes = 15 if x.dtype == jnp.bfloat16 else 31

    kernel = functools.partial(_kwta_invabs_kernel, k=k, num_passes=num_passes)
    out = pl.pallas_call(
        kernel,
        out_shape=jax.ShapeDtypeStruct((rows, N), x.dtype),
        grid=grid,
        in_specs=[pl.BlockSpec((block_rows, N), lambda i: (i, 0))],
        out_specs=pl.BlockSpec((block_rows, N), lambda i: (i, 0)),
        scratch_shapes=[pltpu.VMEM((block_rows, N), jnp.int32)],
        compiler_params=pltpu.CompilerParams(
            dimension_semantics=("parallel",),
            vmem_limit_bytes=32 << 20),
    )(xf)

    return out.reshape(B, C, H, W)


def sparsify2d_invabs_ref(x, sparse_ratio=0.5):
    """Pure-JAX reference matching the PyTorch module exactly."""
    B, C, H, W = x.shape
    N = H * W
    k = int(sparse_ratio * N)
    absx = jnp.abs(x)
    tmpx = absx.reshape(B, C, N)
    topval = -jax.lax.top_k(-tmpx, k)[0][:, :, -1]       # k-th smallest |x|
    topval = topval[:, :, None, None]                    # broadcast over H, W
    comp = (absx >= topval).astype(x.dtype)
    return comp * x


# TODO(synk): record_activation / forward hooks are host-side bookkeeping, not
# part of the forward math; they have no Pallas equivalent and are omitted.


if __name__ == "__main__":
    key = jax.random.PRNGKey(0)
    B, C, H, W = 2, 4, 16, 16
    x = jax.random.normal(key, (B, C, H, W), dtype=jnp.float32)

    out = jax.block_until_ready(sparsify2d_invabs(x, sparse_ratio=0.5))
    ref = sparsify2d_invabs_ref(x, sparse_ratio=0.5)
    assert out.shape == (B, C, H, W)
    assert bool(jnp.array_equal(out, ref)), "Pallas kWTA mismatch vs reference"

    # Unaligned spatial size (14*14 = 196 lanes, not a multiple of 128):
    # exercises the no-pad wrapper path and the VPU count fallback.
    x2 = jax.random.normal(jax.random.PRNGKey(1), (2, 3, 14, 14), dtype=jnp.float32)
    out2 = jax.block_until_ready(sparsify2d_invabs(x2, sparse_ratio=0.5))
    ref2 = sparsify2d_invabs_ref(x2, sparse_ratio=0.5)
    assert bool(jnp.array_equal(out2, ref2)), "Pallas kWTA mismatch (unaligned shape)"

    # bf16 fast path (15-pass binary search).
    x3 = jax.random.normal(jax.random.PRNGKey(2), (2, 4, 16, 16), dtype=jnp.bfloat16)
    out3 = jax.block_until_ready(sparsify2d_invabs(x3, sparse_ratio=0.5))
    ref3 = sparsify2d_invabs_ref(x3, sparse_ratio=0.5)
    assert bool(jnp.array_equal(out3, ref3)), "Pallas kWTA mismatch (bf16)"

    print("KERNEL_OK")
</pallas_src>

<mosaic_0001>
module attributes {stable_mosaic.version = 11 : i64} {
  func.func @_kwta_invabs_kernel(%arg0: i32, %arg1: memref<8x256xf32, #tpu.memory_space<vmem>>, %arg2: memref<8x256xf32, #tpu.memory_space<vmem>>, %arg3: memref<8x256xi32, #tpu.memory_space<vmem>>) attributes {dimension_semantics = [#tpu.dimension_semantics<parallel>], iteration_bounds = array<i64: 1>, scalar_prefetch = 0 : i64, scratch_operands = 1 : i64, tpu.core_type = #tpu.core_type<tc>, window_params = [{transform_indices = @transform_0, window_bounds = array<i64: 8, 256>}, {transform_indices = @transform_1, window_bounds = array<i64: 8, 256>}]} {
    %c0 = arith.constant 0 : index
    %c0_0 = arith.constant 0 : index
    %0 = vector.load %arg1[%c0, %c0_0] : memref<8x256xf32, #tpu.memory_space<vmem>>, vector<8x256xf32>
    %1 = tpu.bitcast %0 : vector<8x256xf32> -> vector<8x256xi32>
    %c2147483647_i32 = arith.constant 2147483647 : i32
    %2 = vector.broadcast %c2147483647_i32 : i32 to vector<8x256xi32>
    %3 = arith.andi %1, %2 : vector<8x256xi32>
    %c0_1 = arith.constant 0 : index
    %c0_2 = arith.constant 0 : index
    %4 = vector.load %arg3[%c0_1, %c0_2] : memref<8x256xi32, #tpu.memory_space<vmem>>, vector<8x256xi32>
    tpu.vector_store %arg3[%c0_1, %c0_2], %3 {strides = array<i32>} : memref<8x256xi32, #tpu.memory_space<vmem>>, vector<8x256xi32>,
    %cst = arith.constant 1.000000e+00 : bf16
    %5 = vector.broadcast %cst : bf16 to vector<256x128xbf16>
    %c0_i32 = arith.constant 0 : i32
    %6 = vector.broadcast %c0_i32 : i32 to vector<8x128xi32>
    %cst_3 = arith.constant 1.280000e+02 : f32
    %c0_i32_4 = arith.constant 0 : i32
    %c31_i32 = arith.constant 31 : i32
    %7 = arith.addi %c0_i32_4, %c31_i32 : i32
    %c1_i32 = arith.constant 1 : i32
    %8 = scf.for %arg4 = %c0_i32_4 to %7 step %c1_i32 iter_args(%arg5 = %6) -> (vector<8x128xi32>)  : i32 {
      %c30_i32 = arith.constant 30 : i32
      %17 = arith.subi %c30_i32, %arg4 : i32
      %c1_i32_13 = arith.constant 1 : i32
      %18 = arith.shli %c1_i32_13, %17 : i32
      %19 = vector.broadcast %18 : i32 to vector<8x128xi32>
      %20 = arith.ori %arg5, %19 : vector<8x128xi32>
      %c0_14 = arith.constant 0 : index
      %c0_15 = arith.constant 0 : index
      %21 = vector.load %arg3[%c0_14, %c0_15] : memref<8x256xi32, #tpu.memory_space<vmem>>, vector<8x256xi32>
      %22 = vector.extract_strided_slice %20 {offsets = [0, 0], sizes = [8, 1], strides = [1, 1]} : vector<8x128xi32> to vector<8x1xi32>
      %23 = vector.broadcast %22 : vector<8x1xi32> to vector<8x256xi32>
      %24 = arith.cmpi slt, %21, %23 : vector<8x256xi32>
      %25 = arith.extui %24 : vector<8x256xi1> to vector<8x256xi32>
      %26 = arith.sitofp %25 : vector<8x256xi32> to vector<8x256xf32>
      %27 = arith.truncf %26 : vector<8x256xf32> to vector<8x256xbf16>
      %cst_16 = arith.constant dense<0.000000e+00> : vector<8x128xf32>
      %28 = tpu.matmul %27, %5, %cst_16 {dimension_numbers = #tpu.dot_dimension_numbers<[1], [0], [0], [1], [0, 0, 1, 1], [], []>} : vector<8x256xbf16>, vector<256x128xbf16>, vector<8x128xf32> -> vector<8x128xf32>
      %29 = vector.broadcast %cst_3 : f32 to vector<8x128xf32>
      %30 = arith.cmpf olt, %28, %29 : vector<8x128xf32>
      %31 = arith.select %30, %20, %arg5 : vector<8x128xi1>, vector<8x128xi32>
      scf.yield %31 : vector<8x128xi32>
    }
    %c31_i32_5 = arith.constant 31 : i32
    %c0_6 = arith.constant 0 : index
    %c0_7 = arith.constant 0 : index
    %9 = vector.load %arg3[%c0_6, %c0_7] : memref<8x256xi32, #tpu.memory_space<vmem>>, vector<8x256xi32>
    %10 = vector.extract_strided_slice %8 {offsets = [0, 0], sizes = [8, 1], strides = [1, 1]} : vector<8x128xi32> to vector<8x1xi32>
    %11 = vector.broadcast %10 : vector<8x1xi32> to vector<8x256xi32>
    %12 = arith.cmpi sge, %9, %11 : vector<8x256xi32>
    %c0_8 = arith.constant 0 : index
    %c0_9 = arith.constant 0 : index
    %13 = vector.load %arg1[%c0_8, %c0_9] : memref<8x256xf32, #tpu.memory_space<vmem>>, vector<8x256xf32>
    %cst_10 = arith.constant 0.000000e+00 : f32
    %14 = vector.broadcast %cst_10 : f32 to vector<8x256xf32>
    %15 = arith.select %12, %13, %14 : vector<8x256xi1>, vector<8x256xf32>
    %c0_11 = arith.constant 0 : index
    %c0_12 = arith.constant 0 : index
    %16 = vector.load %arg2[%c0_11, %c0_12] : memref<8x256xf32, #tpu.memory_space<vmem>>, vector<8x256xf32>
    tpu.vector_store %arg2[%c0_11, %c0_12], %15 {strides = array<i32>} : memref<8x256xf32, #tpu.memory_space<vmem>>, vector<8x256xf32>,
    return
  }
  func.func @transform_0(%arg0: i32) -> (i32, i32) {
    %c0_i32 = arith.constant 0 : i32
    %c0_i32_0 = arith.constant 0 : i32
    return %arg0, %c0_i32 : i32, i32
  }
  func.func @transform_1(%arg0: i32) -> (i32, i32) {
    %c0_i32 = arith.constant 0 : i32
    %c0_i32_0 = arith.constant 0 : i32
    return %arg0, %c0_i32 : i32, i32
  }
}

</mosaic_0001>

<bundles_post_ra>
// kernel: tpu_custom_call.1
= control target key start
LH: loop header
LB: loop body
LE: loop exit
PB: predicated region body
PF: predicated region fallthrough
CT: control target
= control target key end

     0   :  { %6 = vsyncpa [#allocation4], 0  ;;  %s300_s0 = inlined_call_operand.hbm [shape: f32[8,256], index: 0, kind: input, shape index: {}]   ;;  %s301_s1 = inlined_call_operand.hbm [shape: f32[8,256], index: 1, kind: output, shape index: {}]  }
   0x1   :  { %7 = vsyncpa [#allocation5], 0  ;;  %s250_s6 = smov [#allocation3]   ;;  %s186_s10 = scalar_lea.hbm %s300_s0, 256 }
   0x2   :  { %s14_s7 = sshll.u32 %s250_s6, 4  ;;  %p187_p0 = scmp.ne.s32.totalorder %s300_s0, %s186_s10  ;;  %s15_s7 = int_to_ptr.vmem [resolvable:$true] %s14_s7 }
   0x3   :  { %p190_p1 = scmp.lt.u32.totalorder %s186_s10, %s300_s0 }
   0x5   :  { %p192_p2 = pnand %p190_p1, %p187_p0 }
   0x7   :  { %195 = shalt.err (!%p192_p2)
}
   0x8   :  { %s196_s15 = scalar_lea.vmem %s15_s7, 256  ;;  %p201_p4 = scmp.lt.s32.totalorder %s15_s7, %s15_s7 }
   0x9   :  { %p197_p3 = scmp.ne.s32.totalorder %s15_s7, %s196_s15  ;;  %p202_p5 = scmp.lt.s32.totalorder %s196_s15, %s196_s15 }
   0xb   :  { %p203_p6 = por %p202_p5, %p201_p4 }
   0xd   :  { %p204_p7 = pnand %p203_p6, %p197_p3 }
   0xf   :  { %207 = shalt.err (!%p204_p7)
}
  0x10   :  { %17 = dma.hbm_to_vmem [thread:$0]  %s300_s0, 256, %s15_s7, [#allocation4]  }
  0x11   :  { %238 = dma.done.wait [#allocation4], 256  }
  0x12   :  { %239 = vsyncadd [#allocation4], 4294967040  ;;  %v23_v0 = vld [vmem:[#allocation3] sm:$0xff]  ;;  %v24_v1 = vld [vmem:[#allocation3 + $0x8] sm:$0xff]  ;;  %v242_v4 = vmov 0   ;;  %s279_s18 = smov 0  }
  0x13   :  { %v27_v2 = vand.u32 2147483647, %v23_v0  ;;  %v28_v3 = vand.u32 2147483647, %v24_v1 }
  0x15   :  { %29 = vst [vmem:[#allocation2] sm:$0xff] %v27_v2  ;;  %30 = vst [vmem:[#allocation2 + $0x8] sm:$0xff] %v28_v3 }
  0x16 LB: > { %v251_v5 = vmov 0   ;;  %v252_v6 = vmov 1065369472   ;;  %s38_s0 = ssub.s32 30, %s248_s18  ;;  %s253_s19 = smov 1   ;;  %s248_s18 = sphi %s279_s18, %s36_s18   ;;  %v244_v4 = vphi %v242_v4, %v243_v4  }
  0x17   : > { %184 = vset.pattern.permute.xlu0 %v251_v5  ;;  %139 = vmatprep.subr.bf16.mxu0 %v252_v6  ;;  %s39_s20 = sshll.u32 %s253_s19, %s38_s0  ;;  %v254_v12 = vmov 1.0|1.0   ;;  %s36_s18 = sadd.s32 1, %s248_s18  }
  0x18   : > { %140 = vmatpush3.bf16.msra.mxu0 %v252_v6  ;;  %v40_v7 = vstv %s39_s20  ;;  %p33_p8 = scmp.ge.s32.totalorder %s36_s18, 31  }
  0x19   : > { %141 = vmatprep.subr.bf16.mxu0 %v252_v6  ;;  %v41_v8 = vor.u32 %v244_v4, %v40_v7  ;;  %v255_v19 = vmov (%p33_p8), 0   ;;  %s256_s21 = smov (%p33_p8), [#allocation6]   ;;  %v104_v22 = vld [vmem:[#allocation3] sm:$0xff] (%p33_p8)  ;;  %v105_v23 = vld [vmem:[#allocation3 + $0x8] sm:$0xff] (%p33_p8) }
  0x1a   :  { %s116_s22 = sshll.u32 (%p33_p8), %s256_s21, 4  ;;  %s117_s22 = int_to_ptr.vmem [resolvable:$true] %s116_s22 }
  0x1b   : > { %45 = vperm.xlu0 %184, %v41_v8   ;;  %s208_s23 = scalar_lea.vmem (%p33_p8), %s117_s22, 256  ;;  %p213_p10 = scmp.lt.s32.totalorder (%p33_p8), %s117_s22, %s117_s22 }
  0x1c   : > { %142 = vmatpush3.bf16.msra.mxu0 %v252_v6  ;;  %v42_v9 = vld [vmem:[#allocation2] sm:$0xff]  ;;  %v43_v10 = vld [vmem:[#allocation2 + $0x8] sm:$0xff]  ;;  %p209_p9 = scmp.ne.s32.totalorder (%p33_p8), %s117_s22, %s208_s23  ;;  %p214_p11 = scmp.lt.s32.totalorder (%p33_p8), %s208_s23, %s208_s23 }
  0x1d   : > { %143 = vmatprep.subr.bf16.mxu0 %v252_v6  ;;  %v97_v20 = vld [vmem:[#allocation2] sm:$0xff] (%p33_p8)  ;;  %v98_v21 = vld [vmem:[#allocation2 + $0x8] sm:$0xff] (%p33_p8) }
  0x1e   :  { %p215_p12 = por (%p33_p8), %p214_p11, %p213_p10 }
  0x1f   :  { %185 = vset.pattern.permute.xlu0 (%p33_p8), %v255_v19 }
  0x20   : > { %144 = vmatpush3.bf16.msra.mxu0 %v252_v6  ;;  %p216_p13 = pnand (%p33_p8), %p215_p12, %p209_p9 }
  0x21   : > { %145 = vmatprep.subr.bf16.mxu0 %v252_v6 }
  0x24   : > { %146 = vmatpush3.bf16.msra.mxu0 %v252_v6 }
  0x25   : > { %147 = vmatprep.subr.bf16.mxu0 %v252_v6 }
  0x28   : > { %148 = vmatpush3.bf16.msra.mxu0 %v252_v6 }
  0x29   : > { %149 = vmatprep.subr.bf16.mxu0 %v252_v6 }
  0x2c   : > { %150 = vmatpush3.bf16.msra.mxu0 %v252_v6 }
  0x2d   : > { %151 = vmatprep.subr.bf16.mxu0 %v252_v6 }
  0x30   : > { %152 = vmatpush3.bf16.msra.mxu0 %v252_v6 }
  0x31   : > { %153 = vmatprep.subr.bf16.mxu0 %v252_v6 }
  0x34   : > { %154 = vmatpush3.bf16.msra.mxu0 %v252_v6 }
  0x9a   : > { %v46_v11 = vpop.permute.xlu0 %45 }
  0x9b   : > { %vm47_vm0 = vcmp.lt.s32.totalorder %v42_v9, %v46_v11  ;;  %vm48_vm1 = vcmp.lt.s32.totalorder %v43_v10, %v46_v11 }
  0x9c   : > { %vm137_vm2 = vmpackc.low %vm47_vm0, %vm47_vm0 }
  0x9d   : > { %vm135_vm3 = vmpackc.low %vm48_vm1, %vm48_vm1 }
  0x9e   : > { %136 = vmatprep.mubr.msk.bf16.mxu0 %vm135_vm3, %v254_v12 }
  0x9f   : > { %138 = vmatmul.mubr.msk.bf16.vlgmr.msra.gmra.mrb[0].mxu0 %vm137_vm2, %v254_v12 }
 0x172   : > { %v155_v13 = vpop.f32.mrb[0].mxu0  ;;  %35 = sbr.rel (!%p33_p8) target bundleno = 22 (0x16), region = 35 }
 0x173   : > { %v156_v14 = vpop.f32.mrb[1].mxu0 }
 0x174   : > { %v157_v15 = vadd.f32 %v156_v14, %v155_v13  ;;  %v158_v16 = vpop.f32.mrb[2].mxu0 }
 0x175   : > { %v159_v17 = vpop.f32.mrb[3].mxu0 }
 0x176   : > { %vm95_vm4 = vcmp.lt.f32.partialorder %v157_v15, 128.0 }
 0x177   : > { %v96_v18 = vsel %vm95_vm4, %v41_v8, %v244_v4  }
 0x178   : > { %v243_v4 = vmov %v96_v18   ;;  %100 = vperm.xlu0 (%p33_p8), %185, %v96_v18  }
 0x1f7   :  { %v101_v24 = vpop.permute.xlu0 %100 }
 0x1f8   :  { %vm102_vm5 = vcmp.ge.s32.totalorder %v97_v20, %v101_v24  ;;  %vm103_vm6 = vcmp.ge.s32.totalorder %v98_v21, %v101_v24 }
 0x1f9   :  { %v106_v25 = vsel %vm102_vm5, %v104_v22, 0.0  ;;  %v107_v26 = vsel %vm103_vm6, %v105_v23, 0.0 }
 0x1fa   :  { %108 = vst [vmem:[#allocation6] sm:$0xff] %v106_v25  ;;  %109 = vst [vmem:[#allocation6 + $0x8] sm:$0xff] %v107_v26 }
 0x1fb   :  { %219 = shalt.err (!%p216_p13)
}
 0x1fc   :  { %s220_s26 = scalar_lea.hbm %s301_s1, 256 }
 0x1fd   :  { %p221_p0 = scmp.ne.s32.totalorder %s301_s1, %s220_s26  ;;  %p224_p1 = scmp.lt.u32.totalorder %s220_s26, %s301_s1 }
 0x1ff   :  { %p226_p2 = pnand %p224_p1, %p221_p0 }
 0x201   :  { %229 = shalt.err (!%p226_p2)
}
 0x202   :  { %119 = dma.vmem_to_hbm [thread:$0]  %s117_s22, 256, %s301_s1, [#allocation5]  }
 0x203   :  { %240 = dma.done.wait [#allocation5], 256  }
 0x204   :  { %241 = vsyncadd [#allocation5], 4294967040 }
 0x205   :  { %123 = vsyncpa [#allocation4], 1 }
 0x206   :  { %124 = vsyncpa [#allocation5], 1 }

</bundles_post_ra>
